<compile_context>
chip_gen: v7x
topology: tpu7x:2x2x1
jax: 0.10.0
libtpu: 0.0.40
codegen_flags: <defaults>
</compile_context>

<pallas_src>
import jax
import jax.numpy as jnp
from jax.experimental import pallas as pl
from jax.experimental.pallas import tpu as pltpu


# -----------------------------------------------------------------------------
# Model dimensions (synthetic backbone / neck / memory / head)
# -----------------------------------------------------------------------------
C_IN = 4       # input channels
C_FEAT = 32    # backbone / neck feature channels
C_HEAD = 8     # head outputs per pixel (e.g. 4 box + 1 obj + 3 cls)


def _round_up(x, m):
    return ((x + m - 1) // m) * m


# -----------------------------------------------------------------------------
# Fused per-sequence Pallas kernel
#
# grid = (num_pixel_tiles,)   -- single "parallel" axis (megacore shards it)
#
# Per grid step (one pixel tile, ALL frames):
#   mem = 0                                          (memory.clean_memory)
#   for t in range(T):                               (unrolled in-kernel loop)
#       feat = relu(W_bb @ x[t] + b_bb)              (backbone, MXU, bf16 in / f32 acc)
#       mem  = 0.5*feat + 0.5*mem                    (temporal memory, VPU, f32)
#   fpn = relu(W_nk @ mem + b_nk)                    (neck,  last frame only)
#   out = W_hd @ fpn + b_hd                          (head)  -> only HBM store
# -----------------------------------------------------------------------------
def _fused_video_kernel(x_ref, bw_ref, bb_ref, nw_ref, nb_ref, hw_ref, hb_ref,
                        o_ref):
    num_frames = x_ref.shape[0]
    tile_p = x_ref.shape[2]

    bw = bw_ref[...]                                  # [C_FEAT, C_IN]  bf16
    bb = bb_ref[...]                                  # [C_FEAT, 1]     f32

    # memory.clean_memory() semantics: fresh zero state for every sequence.
    mem = jnp.zeros((C_FEAT, tile_p), dtype=jnp.float32)

    # TODO(synk): for very long sequences this full-T unroll should be chunked
    # over a second (arbitrary) grid axis with the memory state in VMEM scratch.
    for t in range(num_frames):                       # static unroll, T is small
        feat = jnp.dot(bw, x_ref[t], preferred_element_type=jnp.float32)
        feat = jnp.maximum(feat + bb, 0.0)            # [C_FEAT, tile_p]
        mem = 0.5 * feat + 0.5 * mem                  # exponential blend (VPU)

    # Last frame only (eval path, seq_nms == False): neck + head, then the
    # single lane-dense HBM store.
    fpn = jnp.dot(nw_ref[...], mem, preferred_element_type=jnp.float32)
    fpn = jnp.maximum(fpn + nb_ref[...], 0.0)         # [C_FEAT, tile_p]
    out = jnp.dot(hw_ref[...], fpn, preferred_element_type=jnp.float32)
    o_ref[...] = (out + hb_ref[...]).astype(o_ref.dtype)  # [C_HEAD, tile_p]


def fused_video_forward(params, xs_tcp, *, tile_p):
    """xs_tcp: [T, C_IN, P_pad] bf16 -> head output of last frame [C_HEAD, P_pad] f32."""
    T, C, P_pad = xs_tcp.shape
    assert P_pad % tile_p == 0 and tile_p % 128 == 0
    num_p_tiles = P_pad // tile_p

    bw_bf16 = params["backbone_w"].astype(jnp.bfloat16)

    return pl.pallas_call(
        _fused_video_kernel,
        out_shape=jax.ShapeDtypeStruct((C_HEAD, P_pad), jnp.float32),
        grid_spec=pltpu.PrefetchScalarGridSpec(
            num_scalar_prefetch=0,
            grid=(num_p_tiles,),
            in_specs=[
                # all T frames of this pixel tile: [T, C_IN, tile_p] (lane-dense)
                pl.BlockSpec((T, C, tile_p), lambda r: (0, 0, r)),
                # weights / biases: constant index -> fetched once, kept resident
                pl.BlockSpec((C_FEAT, C_IN), lambda r: (0, 0)),
                pl.BlockSpec((C_FEAT, 1), lambda r: (0, 0)),
                pl.BlockSpec((C_FEAT, C_FEAT), lambda r: (0, 0)),
                pl.BlockSpec((C_FEAT, 1), lambda r: (0, 0)),
                pl.BlockSpec((C_HEAD, C_FEAT), lambda r: (0, 0)),
                pl.BlockSpec((C_HEAD, 1), lambda r: (0, 0)),
            ],
            # lane-dense output slab, written once per pixel tile
            out_specs=pl.BlockSpec((C_HEAD, tile_p), lambda r: (0, r)),
        ),
        compiler_params=pltpu.CompilerParams(
            dimension_semantics=("parallel",),
            vmem_limit_bytes=32 * 1024 * 1024),
    )(xs_tcp,
      bw_bf16, params["backbone_b"],
      params["neck_w"], params["neck_b"],
      params["head_w"], params["head_b"])


# -----------------------------------------------------------------------------
# Deterministic synthetic parameters (lane-dense: W[out_c, in_c], b[out_c, 1])
# -----------------------------------------------------------------------------
def make_params():
    def det(shape, scale, offset):
        n = 1
        for s in shape:
            n *= s
        return (scale * (jnp.arange(n, dtype=jnp.float32) % 7 - 3.0) + offset
                ).reshape(shape)

    return {
        "backbone_w": det((C_FEAT, C_IN), 0.05, 0.01),
        "backbone_b": det((C_FEAT, 1), 0.01, 0.0),
        "neck_w": det((C_FEAT, C_FEAT), 0.02, 0.0),
        "neck_b": det((C_FEAT, 1), 0.005, 0.0),
        "head_w": det((C_HEAD, C_FEAT), 0.03, 0.0),
        "head_b": det((C_HEAD, 1), 0.01, 0.0),
    }


# -----------------------------------------------------------------------------
# model.forward equivalent (inference path, memory present, seq_nms = False)
# -----------------------------------------------------------------------------
def model_forward(params, xs, *, tile_p=8192):
    """xs: [N, C, H, W, T] float32 -> head outputs of the last frame [N, C_HEAD, H, W]."""
    N, C, H, W, T = xs.shape
    P = N * H * W

    # One layout pass to lane-dense [T, C, P] in bf16 (cast first so the
    # transpose moves half the bytes).
    # TODO(synk): for realistic sizes this wrapper transpose is an extra full
    # HBM pass; upstream should produce the video already as [T, C, P].
    xs_tcp = jnp.transpose(xs.astype(jnp.bfloat16), (4, 1, 0, 2, 3)).reshape(T, C, P)

    # Pick a lane-dense pixel tile: multiple of 128, capped by P, and split
    # into >=2 tiles whenever possible so both v7x TensorCores get work.
    P128 = _round_up(P, 128)
    tp = min(tile_p, P128)
    if tp == P128 and P128 >= 256:
        tp = _round_up(P128 // 2, 128)
    tp = max(tp, 128)

    P_pad = _round_up(P, tp)
    if P_pad != P:
        xs_tcp = jnp.pad(xs_tcp, ((0, 0), (0, 0), (0, P_pad - P)))

    out_flat = fused_video_forward(params, xs_tcp, tile_p=tp)   # [C_HEAD, P_pad]
    out_flat = out_flat[:, :P]

    # TODO(synk): seq_nms branch, training-loss accumulation and the
    # evaluator.add_result / end_a_batch bookkeeping have no tensor-compute
    # Pallas equivalent; only the eval hot path is implemented.
    # memory.clean_memory(): memory state is per-call kernel-local, so nothing
    # persists — reset is implicit.
    return jnp.transpose(out_flat.reshape(C_HEAD, N, H, W), (1, 0, 2, 3))


# -----------------------------------------------------------------------------
# Reference in plain JAX (mirrors the kernel's bf16 quantization of x / W_bb so
# the comparison is tight; all accumulation in f32, like the kernel).
# -----------------------------------------------------------------------------
def reference_forward(params, xs):
    N, C, H, W, T = xs.shape
    P = N * H * W
    x_q = xs.astype(jnp.bfloat16).astype(jnp.float32)
    bw_q = params["backbone_w"].astype(jnp.bfloat16).astype(jnp.float32)

    mem = jnp.zeros((C_FEAT, P), dtype=jnp.float32)
    for i in range(T):
        frame = x_q[..., i]                                         # [N, C, H, W]
        x_flat = jnp.transpose(frame, (1, 0, 2, 3)).reshape(C, P)   # [C, P]
        feat = jnp.maximum(bw_q @ x_flat + params["backbone_b"], 0.0)
        mem = 0.5 * feat + 0.5 * mem
    fpn = jnp.maximum(params["neck_w"] @ mem + params["neck_b"], 0.0)
    out = params["head_w"] @ fpn + params["head_b"]                 # [C_HEAD, P]
    return jnp.transpose(out.reshape(C_HEAD, N, H, W), (1, 0, 2, 3))


if __name__ == "__main__":
    key = jax.random.PRNGKey(0)
    N, H, W, T = 2, 16, 16, 8
    xs = jax.random.normal(key, (N, C_IN, H, W, T), dtype=jnp.float32)
    params = make_params()

    fwd = jax.jit(model_forward)
    out = jax.block_until_ready(fwd(params, xs))

    ref = reference_forward(params, xs)
    assert out.shape == (N, C_HEAD, H, W), out.shape
    assert jnp.allclose(out, ref, atol=2e-2, rtol=2e-2), float(jnp.abs(out - ref).max())
    print("KERNEL_OK")
</pallas_src>

<mosaic_0001>
module attributes {stable_mosaic.version = 11 : i64} {
  func.func @_fused_video_kernel(%arg0: i32, %arg1: memref<8x4x256xbf16, #tpu.memory_space<vmem>>, %arg2: memref<32x4xbf16, #tpu.memory_space<vmem>>, %arg3: memref<32x1xf32, #tpu.memory_space<vmem>>, %arg4: memref<32x32xf32, #tpu.memory_space<vmem>>, %arg5: memref<32x1xf32, #tpu.memory_space<vmem>>, %arg6: memref<8x32xf32, #tpu.memory_space<vmem>>, %arg7: memref<8x1xf32, #tpu.memory_space<vmem>>, %arg8: memref<8x256xf32, #tpu.memory_space<vmem>>) attributes {dimension_semantics = [#tpu.dimension_semantics<parallel>], iteration_bounds = array<i64: 2>, scalar_prefetch = 0 : i64, scratch_operands = 0 : i64, tpu.core_type = #tpu.core_type<tc>, window_params = [{transform_indices = @transform_0, window_bounds = array<i64: 8, 4, 256>}, {pipeline_mode = #tpu.pipeline_mode<synchronous>, transform_indices = @transform_1, window_bounds = array<i64: 32, 4>}, {pipeline_mode = #tpu.pipeline_mode<synchronous>, transform_indices = @transform_2, window_bounds = array<i64: 32, 1>}, {pipeline_mode = #tpu.pipeline_mode<synchronous>, transform_indices = @transform_3, window_bounds = array<i64: 32, 32>}, {pipeline_mode = #tpu.pipeline_mode<synchronous>, transform_indices = @transform_4, window_bounds = array<i64: 32, 1>}, {pipeline_mode = #tpu.pipeline_mode<synchronous>, transform_indices = @transform_5, window_bounds = array<i64: 8, 32>}, {pipeline_mode = #tpu.pipeline_mode<synchronous>, transform_indices = @transform_6, window_bounds = array<i64: 8, 1>}, {transform_indices = @transform_7, window_bounds = array<i64: 8, 256>}]} {
    %c0 = arith.constant 0 : index
    %c0_0 = arith.constant 0 : index
    %0 = vector.load %arg2[%c0, %c0_0] : memref<32x4xbf16, #tpu.memory_space<vmem>>, vector<32x4xbf16>
    %c0_1 = arith.constant 0 : index
    %c0_2 = arith.constant 0 : index
    %1 = vector.load %arg3[%c0_1, %c0_2] : memref<32x1xf32, #tpu.memory_space<vmem>>, vector<32x1xf32>
    %cst = arith.constant 0.000000e+00 : f32
    %2 = vector.broadcast %cst : f32 to vector<32x256xf32>
    %c0_3 = arith.constant 0 : index
    %c0_4 = arith.constant 0 : index
    %c0_5 = arith.constant 0 : index
    %3 = vector.load %arg1[%c0_3, %c0_4, %c0_5] : memref<8x4x256xbf16, #tpu.memory_space<vmem>>, vector<1x4x256xbf16>
    %4 = vector.shape_cast %3 : vector<1x4x256xbf16> to vector<4x256xbf16>
    %cst_6 = arith.constant dense<0.000000e+00> : vector<32x256xf32>
    %5 = tpu.matmul %0, %4, %cst_6 {dimension_numbers = #tpu.dot_dimension_numbers<[1], [0], [0], [1], [0, 0, 1, 1], [], []>} : vector<32x4xbf16>, vector<4x256xbf16>, vector<32x256xf32> -> vector<32x256xf32>
    %6 = vector.broadcast %1 : vector<32x1xf32> to vector<32x256xf32>
    %7 = arith.addf %5, %6 : vector<32x256xf32>
    %cst_7 = arith.constant 0.000000e+00 : f32
    %8 = vector.broadcast %cst_7 : f32 to vector<32x256xf32>
    %9 = arith.maximumf %7, %8 : vector<32x256xf32>
    %cst_8 = arith.constant 5.000000e-01 : f32
    %10 = vector.broadcast %cst_8 : f32 to vector<32x256xf32>
    %11 = arith.mulf %10, %9 : vector<32x256xf32>
    %cst_9 = arith.constant 5.000000e-01 : f32
    %12 = vector.broadcast %cst_9 : f32 to vector<32x256xf32>
    %13 = arith.mulf %12, %2 : vector<32x256xf32>
    %14 = arith.addf %11, %13 : vector<32x256xf32>
    %c1 = arith.constant 1 : index
    %c0_10 = arith.constant 0 : index
    %c0_11 = arith.constant 0 : index
    %15 = vector.load %arg1[%c1, %c0_10, %c0_11] : memref<8x4x256xbf16, #tpu.memory_space<vmem>>, vector<1x4x256xbf16>
    %16 = vector.shape_cast %15 : vector<1x4x256xbf16> to vector<4x256xbf16>
    %cst_12 = arith.constant dense<0.000000e+00> : vector<32x256xf32>
    %17 = tpu.matmul %0, %16, %cst_12 {dimension_numbers = #tpu.dot_dimension_numbers<[1], [0], [0], [1], [0, 0, 1, 1], [], []>} : vector<32x4xbf16>, vector<4x256xbf16>, vector<32x256xf32> -> vector<32x256xf32>
    %18 = vector.broadcast %1 : vector<32x1xf32> to vector<32x256xf32>
    %19 = arith.addf %17, %18 : vector<32x256xf32>
    %cst_13 = arith.constant 0.000000e+00 : f32
    %20 = vector.broadcast %cst_13 : f32 to vector<32x256xf32>
    %21 = arith.maximumf %19, %20 : vector<32x256xf32>
    %cst_14 = arith.constant 5.000000e-01 : f32
    %22 = vector.broadcast %cst_14 : f32 to vector<32x256xf32>
    %23 = arith.mulf %22, %21 : vector<32x256xf32>
    %cst_15 = arith.constant 5.000000e-01 : f32
    %24 = vector.broadcast %cst_15 : f32 to vector<32x256xf32>
    %25 = arith.mulf %24, %14 : vector<32x256xf32>
    %26 = arith.addf %23, %25 : vector<32x256xf32>
    %c2 = arith.constant 2 : index
    %c0_16 = arith.constant 0 : index
    %c0_17 = arith.constant 0 : index
    %27 = vector.load %arg1[%c2, %c0_16, %c0_17] : memref<8x4x256xbf16, #tpu.memory_space<vmem>>, vector<1x4x256xbf16>
    %28 = vector.shape_cast %27 : vector<1x4x256xbf16> to vector<4x256xbf16>
    %cst_18 = arith.constant dense<0.000000e+00> : vector<32x256xf32>
    %29 = tpu.matmul %0, %28, %cst_18 {dimension_numbers = #tpu.dot_dimension_numbers<[1], [0], [0], [1], [0, 0, 1, 1], [], []>} : vector<32x4xbf16>, vector<4x256xbf16>, vector<32x256xf32> -> vector<32x256xf32>
    %30 = vector.broadcast %1 : vector<32x1xf32> to vector<32x256xf32>
    %31 = arith.addf %29, %30 : vector<32x256xf32>
    %cst_19 = arith.constant 0.000000e+00 : f32
    %32 = vector.broadcast %cst_19 : f32 to vector<32x256xf32>
    %33 = arith.maximumf %31, %32 : vector<32x256xf32>
    %cst_20 = arith.constant 5.000000e-01 : f32
    %34 = vector.broadcast %cst_20 : f32 to vector<32x256xf32>
    %35 = arith.mulf %34, %33 : vector<32x256xf32>
    %cst_21 = arith.constant 5.000000e-01 : f32
    %36 = vector.broadcast %cst_21 : f32 to vector<32x256xf32>
    %37 = arith.mulf %36, %26 : vector<32x256xf32>
    %38 = arith.addf %35, %37 : vector<32x256xf32>
    %c3 = arith.constant 3 : index
    %c0_22 = arith.constant 0 : index
    %c0_23 = arith.constant 0 : index
    %39 = vector.load %arg1[%c3, %c0_22, %c0_23] : memref<8x4x256xbf16, #tpu.memory_space<vmem>>, vector<1x4x256xbf16>
    %40 = vector.shape_cast %39 : vector<1x4x256xbf16> to vector<4x256xbf16>
    %cst_24 = arith.constant dense<0.000000e+00> : vector<32x256xf32>
    %41 = tpu.matmul %0, %40, %cst_24 {dimension_numbers = #tpu.dot_dimension_numbers<[1], [0], [0], [1], [0, 0, 1, 1], [], []>} : vector<32x4xbf16>, vector<4x256xbf16>, vector<32x256xf32> -> vector<32x256xf32>
    %42 = vector.broadcast %1 : vector<32x1xf32> to vector<32x256xf32>
    %43 = arith.addf %41, %42 : vector<32x256xf32>
    %cst_25 = arith.constant 0.000000e+00 : f32
    %44 = vector.broadcast %cst_25 : f32 to vector<32x256xf32>
    %45 = arith.maximumf %43, %44 : vector<32x256xf32>
    %cst_26 = arith.constant 5.000000e-01 : f32
    %46 = vector.broadcast %cst_26 : f32 to vector<32x256xf32>
    %47 = arith.mulf %46, %45 : vector<32x256xf32>
    %cst_27 = arith.constant 5.000000e-01 : f32
    %48 = vector.broadcast %cst_27 : f32 to vector<32x256xf32>
    %49 = arith.mulf %48, %38 : vector<32x256xf32>
    %50 = arith.addf %47, %49 : vector<32x256xf32>
    %c4 = arith.constant 4 : index
    %c0_28 = arith.constant 0 : index
    %c0_29 = arith.constant 0 : index
    %51 = vector.load %arg1[%c4, %c0_28, %c0_29] : memref<8x4x256xbf16, #tpu.memory_space<vmem>>, vector<1x4x256xbf16>
    %52 = vector.shape_cast %51 : vector<1x4x256xbf16> to vector<4x256xbf16>
    %cst_30 = arith.constant dense<0.000000e+00> : vector<32x256xf32>
    %53 = tpu.matmul %0, %52, %cst_30 {dimension_numbers = #tpu.dot_dimension_numbers<[1], [0], [0], [1], [0, 0, 1, 1], [], []>} : vector<32x4xbf16>, vector<4x256xbf16>, vector<32x256xf32> -> vector<32x256xf32>
    %54 = vector.broadcast %1 : vector<32x1xf32> to vector<32x256xf32>
    %55 = arith.addf %53, %54 : vector<32x256xf32>
    %cst_31 = arith.constant 0.000000e+00 : f32
    %56 = vector.broadcast %cst_31 : f32 to vector<32x256xf32>
    %57 = arith.maximumf %55, %56 : vector<32x256xf32>
    %cst_32 = arith.constant 5.000000e-01 : f32
    %58 = vector.broadcast %cst_32 : f32 to vector<32x256xf32>
    %59 = arith.mulf %58, %57 : vector<32x256xf32>
    %cst_33 = arith.constant 5.000000e-01 : f32
    %60 = vector.broadcast %cst_33 : f32 to vector<32x256xf32>
    %61 = arith.mulf %60, %50 : vector<32x256xf32>
    %62 = arith.addf %59, %61 : vector<32x256xf32>
    %c5 = arith.constant 5 : index
    %c0_34 = arith.constant 0 : index
    %c0_35 = arith.constant 0 : index
    %63 = vector.load %arg1[%c5, %c0_34, %c0_35] : memref<8x4x256xbf16, #tpu.memory_space<vmem>>, vector<1x4x256xbf16>
    %64 = vector.shape_cast %63 : vector<1x4x256xbf16> to vector<4x256xbf16>
    %cst_36 = arith.constant dense<0.000000e+00> : vector<32x256xf32>
    %65 = tpu.matmul %0, %64, %cst_36 {dimension_numbers = #tpu.dot_dimension_numbers<[1], [0], [0], [1], [0, 0, 1, 1], [], []>} : vector<32x4xbf16>, vector<4x256xbf16>, vector<32x256xf32> -> vector<32x256xf32>
    %66 = vector.broadcast %1 : vector<32x1xf32> to vector<32x256xf32>
    %67 = arith.addf %65, %66 : vector<32x256xf32>
    %cst_37 = arith.constant 0.000000e+00 : f32
    %68 = vector.broadcast %cst_37 : f32 to vector<32x256xf32>
    %69 = arith.maximumf %67, %68 : vector<32x256xf32>
    %cst_38 = arith.constant 5.000000e-01 : f32
    %70 = vector.broadcast %cst_38 : f32 to vector<32x256xf32>
    %71 = arith.mulf %70, %69 : vector<32x256xf32>
    %cst_39 = arith.constant 5.000000e-01 : f32
    %72 = vector.broadcast %cst_39 : f32 to vector<32x256xf32>
    %73 = arith.mulf %72, %62 : vector<32x256xf32>
    %74 = arith.addf %71, %73 : vector<32x256xf32>
    %c6 = arith.constant 6 : index
    %c0_40 = arith.constant 0 : index
    %c0_41 = arith.constant 0 : index
    %75 = vector.load %arg1[%c6, %c0_40, %c0_41] : memref<8x4x256xbf16, #tpu.memory_space<vmem>>, vector<1x4x256xbf16>
    %76 = vector.shape_cast %75 : vector<1x4x256xbf16> to vector<4x256xbf16>
    %cst_42 = arith.constant dense<0.000000e+00> : vector<32x256xf32>
    %77 = tpu.matmul %0, %76, %cst_42 {dimension_numbers = #tpu.dot_dimension_numbers<[1], [0], [0], [1], [0, 0, 1, 1], [], []>} : vector<32x4xbf16>, vector<4x256xbf16>, vector<32x256xf32> -> vector<32x256xf32>
    %78 = vector.broadcast %1 : vector<32x1xf32> to vector<32x256xf32>
    %79 = arith.addf %77, %78 : vector<32x256xf32>
    %cst_43 = arith.constant 0.000000e+00 : f32
    %80 = vector.broadcast %cst_43 : f32 to vector<32x256xf32>
    %81 = arith.maximumf %79, %80 : vector<32x256xf32>
    %cst_44 = arith.constant 5.000000e-01 : f32
    %82 = vector.broadcast %cst_44 : f32 to vector<32x256xf32>
    %83 = arith.mulf %82, %81 : vector<32x256xf32>
    %cst_45 = arith.constant 5.000000e-01 : f32
    %84 = vector.broadcast %cst_45 : f32 to vector<32x256xf32>
    %85 = arith.mulf %84, %74 : vector<32x256xf32>
    %86 = arith.addf %83, %85 : vector<32x256xf32>
    %c7 = arith.constant 7 : index
    %c0_46 = arith.constant 0 : index
    %c0_47 = arith.constant 0 : index
    %87 = vector.load %arg1[%c7, %c0_46, %c0_47] : memref<8x4x256xbf16, #tpu.memory_space<vmem>>, vector<1x4x256xbf16>
    %88 = vector.shape_cast %87 : vector<1x4x256xbf16> to vector<4x256xbf16>
    %cst_48 = arith.constant dense<0.000000e+00> : vector<32x256xf32>
    %89 = tpu.matmul %0, %88, %cst_48 {dimension_numbers = #tpu.dot_dimension_numbers<[1], [0], [0], [1], [0, 0, 1, 1], [], []>} : vector<32x4xbf16>, vector<4x256xbf16>, vector<32x256xf32> -> vector<32x256xf32>
    %90 = vector.broadcast %1 : vector<32x1xf32> to vector<32x256xf32>
    %91 = arith.addf %89, %90 : vector<32x256xf32>
    %cst_49 = arith.constant 0.000000e+00 : f32
    %92 = vector.broadcast %cst_49 : f32 to vector<32x256xf32>
    %93 = arith.maximumf %91, %92 : vector<32x256xf32>
    %cst_50 = arith.constant 5.000000e-01 : f32
    %94 = vector.broadcast %cst_50 : f32 to vector<32x256xf32>
    %95 = arith.mulf %94, %93 : vector<32x256xf32>
    %cst_51 = arith.constant 5.000000e-01 : f32
    %96 = vector.broadcast %cst_51 : f32 to vector<32x256xf32>
    %97 = arith.mulf %96, %86 : vector<32x256xf32>
    %98 = arith.addf %95, %97 : vector<32x256xf32>
    %c0_52 = arith.constant 0 : index
    %c0_53 = arith.constant 0 : index
    %99 = vector.load %arg4[%c0_52, %c0_53] : memref<32x32xf32, #tpu.memory_space<vmem>>, vector<32x32xf32>
    %cst_54 = arith.constant dense<0.000000e+00> : vector<32x256xf32>
    %100 = tpu.matmul %99, %98, %cst_54 {dimension_numbers = #tpu.dot_dimension_numbers<[1], [0], [0], [1], [0, 0, 1, 1], [], []>} : vector<32x32xf32>, vector<32x256xf32>, vector<32x256xf32> -> vector<32x256xf32>
    %c0_55 = arith.constant 0 : index
    %c0_56 = arith.constant 0 : index
    %101 = vector.load %arg5[%c0_55, %c0_56] : memref<32x1xf32, #tpu.memory_space<vmem>>, vector<32x1xf32>
    %102 = vector.broadcast %101 : vector<32x1xf32> to vector<32x256xf32>
    %103 = arith.addf %100, %102 : vector<32x256xf32>
    %cst_57 = arith.constant 0.000000e+00 : f32
    %104 = vector.broadcast %cst_57 : f32 to vector<32x256xf32>
    %105 = arith.maximumf %103, %104 : vector<32x256xf32>
    %c0_58 = arith.constant 0 : index
    %c0_59 = arith.constant 0 : index
    %106 = vector.load %arg6[%c0_58, %c0_59] : memref<8x32xf32, #tpu.memory_space<vmem>>, vector<8x32xf32>
    %cst_60 = arith.constant dense<0.000000e+00> : vector<8x256xf32>
    %107 = tpu.matmul %106, %105, %cst_60 {dimension_numbers = #tpu.dot_dimension_numbers<[1], [0], [0], [1], [0, 0, 1, 1], [], []>} : vector<8x32xf32>, vector<32x256xf32>, vector<8x256xf32> -> vector<8x256xf32>
    %c0_61 = arith.constant 0 : index
    %c0_62 = arith.constant 0 : index
    %108 = vector.load %arg7[%c0_61, %c0_62] : memref<8x1xf32, #tpu.memory_space<vmem>>, vector<8x1xf32>
    %109 = vector.broadcast %108 : vector<8x1xf32> to vector<8x256xf32>
    %110 = arith.addf %107, %109 : vector<8x256xf32>
    %c0_63 = arith.constant 0 : index
    %c0_64 = arith.constant 0 : index
    %111 = vector.load %arg8[%c0_63, %c0_64] : memref<8x256xf32, #tpu.memory_space<vmem>>, vector<8x256xf32>
    tpu.vector_store %arg8[%c0_63, %c0_64], %110 {strides = array<i32>} : memref<8x256xf32, #tpu.memory_space<vmem>>, vector<8x256xf32>,
    return
  }
  func.func @transform_0(%arg0: i32) -> (i32, i32, i32) {
    %c0_i32 = arith.constant 0 : i32
    %c0_i32_0 = arith.constant 0 : i32
    %c0_i32_1 = arith.constant 0 : i32
    return %c0_i32, %c0_i32_0, %arg0 : i32, i32, i32
  }
  func.func @transform_1(%arg0: i32) -> (i32, i32) {
    %c0_i32 = arith.constant 0 : i32
    %c0_i32_0 = arith.constant 0 : i32
    %c0_i32_1 = arith.constant 0 : i32
    return %c0_i32, %c0_i32_0 : i32, i32
  }
  func.func @transform_2(%arg0: i32) -> (i32, i32) {
    %c0_i32 = arith.constant 0 : i32
    %c0_i32_0 = arith.constant 0 : i32
    %c0_i32_1 = arith.constant 0 : i32
    return %c0_i32, %c0_i32_0 : i32, i32
  }
  func.func @transform_3(%arg0: i32) -> (i32, i32) {
    %c0_i32 = arith.constant 0 : i32
    %c0_i32_0 = arith.constant 0 : i32
    %c0_i32_1 = arith.constant 0 : i32
    return %c0_i32, %c0_i32_0 : i32, i32
  }
  func.func @transform_4(%arg0: i32) -> (i32, i32) {
    %c0_i32 = arith.constant 0 : i32
    %c0_i32_0 = arith.constant 0 : i32
    %c0_i32_1 = arith.constant 0 : i32
    return %c0_i32, %c0_i32_0 : i32, i32
  }
  func.func @transform_5(%arg0: i32) -> (i32, i32) {
    %c0_i32 = arith.constant 0 : i32
    %c0_i32_0 = arith.constant 0 : i32
    %c0_i32_1 = arith.constant 0 : i32
    return %c0_i32, %c0_i32_0 : i32, i32
  }
  func.func @transform_6(%arg0: i32) -> (i32, i32) {
    %c0_i32 = arith.constant 0 : i32
    %c0_i32_0 = arith.constant 0 : i32
    %c0_i32_1 = arith.constant 0 : i32
    return %c0_i32, %c0_i32_0 : i32, i32
  }
  func.func @transform_7(%arg0: i32) -> (i32, i32) {
    %c0_i32 = arith.constant 0 : i32
    %c0_i32_0 = arith.constant 0 : i32
    return %c0_i32, %arg0 : i32, i32
  }
}

</mosaic_0001>

<bundles_post_ra>
// kernel: model_forward.1
= control target key start
LH: loop header
LB: loop body
LE: loop exit
PB: predicated region body
PF: predicated region fallthrough
CT: control target
= control target key end

     0   :  { %s1662_s24 = smov 0   ;;  %s1664_s25 = smov 0   ;;  %s1937_s0 = inlined_call_operand.vmem [shape: bf16[8,4,512], index: 0, kind: input, shape index: {}]   ;;  %s1938_s1 = inlined_call_operand.vmem [shape: bf16[32,4], index: 1, kind: input, shape index: {}]   ;;  %s1939_s2 = inlined_call_operand.vmem [shape: f32[32,1], index: 2, kind: input, shape index: {}]   ;;  %s1940_s3 = inlined_call_operand.vmem [shape: f32[32,32], index: 3, kind: input, shape index: {}]   ;;  %s1941_s4 = inlined_call_operand.vmem [shape: f32[32,1], index: 4, kind: input, shape index: {}]   ;;  %s1942_s5 = inlined_call_operand.vmem [shape: f32[8,32], index: 5, kind: input, shape index: {}]   ;;  %s1943_s6 = inlined_call_operand.vmem [shape: f32[8,1], index: 6, kind: input, shape index: {}]   ;;  %s1944_s7 = inlined_call_operand.vmem [shape: f32[8,512], index: 7, kind: output, shape index: {}]  }
   0x1   :  { %s1666_s26 = smov 0  }
   0x2 LB: > { %s1488_s27 = sadd.s32 4294967295, %s1618_s26   ;;  %s1679_s28 = sadd.s32 1, %s1618_s26   ;;  %s1618_s26 = sphi %s1666_s26, %s1947_s26   ;;  %s1614_s25 = sphi %s1664_s25, %s1946_s25   ;;  %s1610_s24 = sphi %s1662_s24, %s1945_s24  }
   0x3   : > { %s21_s29 = ssub.s32 %s1618_s26, %s1679_s28  ;;  %s24_s30 = sadd.s32 1, %s1614_s25 }
   0x4   : > { %p22_p0 = scmp.eq.s32.totalorder %s21_s29, 0  ;;  %p31_p1 = scmp.ne.s32.totalorder %s1614_s25, %s1610_s24 }
   0x5   : > { %p32_p2 = scmp.eq.s32.totalorder %s1618_s26, 0  ;;  %p1491_p4 = scmp.ge.s32.totalorder %s1618_s26, 2 }
   0x6   : > { %s1688_s8 = scalar_select %p22_p0, %s1614_s25, %s24_s30  }
   0x7   : > { %p33_p3 = por %p32_p2, %p31_p1  ;;  %227 = sbr.rel (%p1491_p4) target bundleno = 23 (0x17), region = 40 }
   0xe   : > { %230 = sbr.rel (!%p33_p3) target bundleno = 23 (0x17), region = 44  ;;  %s232_s9 = sand.u32 (%p33_p3), 1, %s1614_s25  }
   0xf   : > { %s1547_s10 = sshll.u32 (%p33_p3), %s1618_s26, 2  ;;  %s1492_s11 = sshll.u32 (%p33_p3), %s232_s9, 5 }
  0x10   : > { %s237_s14 = scalar_lea.vmem (%p33_p3), %s1937_s0, %s1547_s10  ;;  %s234_s15 = scalar_lea.vmem (%p33_p3), [#allocation2], %s1492_s11 }
  0x11   : > { %v253_v0 = vld [vmem:[%s237_s14] sm:$0xf] (%p33_p3)  ;;  %v255_v1 = vld [vmem:[%s237_s14 + $0x8] sm:$0xf] (%p33_p3)  ;;  %v257_v2 = vld [vmem:[%s237_s14 + $0x10] sm:$0xf] (%p33_p3) }
  0x12   : > { %254 = vst [vmem:[%s234_s15] sm:$0xf] (%p33_p3), %v253_v0  ;;  %256 = vst [vmem:[%s234_s15 + $0x4] sm:$0xf] (%p33_p3), %v255_v1  ;;  %v259_v3 = vld [vmem:[%s237_s14 + $0x18] sm:$0xf] (%p33_p3) }
  0x13   : > { %v261_v4 = vld [vmem:[%s237_s14 + $0x20] sm:$0xf] (%p33_p3)  ;;  %258 = vst [vmem:[%s234_s15 + $0x8] sm:$0xf] (%p33_p3), %v257_v2  ;;  %260 = vst [vmem:[%s234_s15 + $0xc] sm:$0xf] (%p33_p3), %v259_v3 }
  0x14   : > { %262 = vst [vmem:[%s234_s15 + $0x10] sm:$0xf] (%p33_p3), %v261_v4  ;;  %v263_v5 = vld [vmem:[%s237_s14 + $0x28] sm:$0xf] (%p33_p3)  ;;  %v265_v6 = vld [vmem:[%s237_s14 + $0x30] sm:$0xf] (%p33_p3) }
  0x15   : > { %v267_v7 = vld [vmem:[%s237_s14 + $0x38] sm:$0xf]  ;;  %264 = vst [vmem:[%s234_s15 + $0x14] sm:$0xf] %v263_v5  ;;  %266 = vst [vmem:[%s234_s15 + $0x18] sm:$0xf] %v265_v6 }
  0x16   : > { %268 = vst [vmem:[%s234_s15 + $0x1c] sm:$0xf] %v267_v7 }
  0x17 PF: > { %p1495_p5 = scmp.ge.s32.totalorder %s1618_s26, 1  ;;  %p306_p6 = scmp.lt.s32.totalorder %s1618_s26, 3 }
  0x19   : > { %p307_p7 = pnand %p1495_p5, %p306_p6 }
  0x1a   : > { %s313_s16 = sand.u32 (!%p307_p7), 1, %s1610_s24   ;;  %vm407_vm0 = vcmask (!%p307_p7), 1041408   ;;  %v1620_v8 = vmov (!%p307_p7), 0   ;;  %v358_v9 = vld [vmem:[%s1939_s2 + $0x10] sm:$0xff] (!%p307_p7)  ;;  %v356_v11 = vld [vmem:[%s1939_s2] sm:$0xff] (!%p307_p7)  ;;  %v1722_v16 = vld [vmem:[%s1938_s1 + $0x8] sm:$0xff] (!%p307_p7)  }
  0x1b   : > { %310 = sbr.rel (%p307_p7) target bundleno = 786 (0x312), region = 85  ;;  %s1496_s17 = sshll.u32 (!%p307_p7), %s313_s16, 5  ;;  %446 = vmatprep.mubr.bf16.mxu0 (!%p307_p7), %v1620_v8  ;;  %456 = vmatprep.mubr.bf16.mxu1 (!%p307_p7), %v1620_v8  ;;  %v1717_v15 = vld [vmem:[%s1938_s1] sm:$0xff] (!%p307_p7)   ;;  %v359_v21 = vld [vmem:[%s1939_s2 + $0x18] sm:$0xff] (!%p307_p7)  ;;  %v357_v22 = vld [vmem:[%s1939_s2 + $0x8] sm:$0xff] (!%p307_p7)  ;;  %vm400_vm1 = vcmask (!%p307_p7), 31744  }
  0x1c   : > { %1593 = vset.pattern.permute.xlu1 (!%p307_p7), %v1620_v8  ;;  %1592 = vset.pattern.permute.xlu0 (!%p307_p7), %v1620_v8  ;;  %s1706_s20 = scalar_lea.vmem (!%p307_p7), [#allocation2], %s1496_s17  ;;  %v1209_v28 = vld [vmem:[%s1941_s4] sm:$0xff] (!%p307_p7)  ;;  %v1210_v29 = vld [vmem:[%s1941_s4 + $0x8] sm:$0xff] (!%p307_p7)  ;;  %v1211_v36 = vld [vmem:[%s1941_s4 + $0x10] sm:$0xff] (!%p307_p7)  ;;  %v1621_v44 = vmov (!%p307_p7), 0.0   ;;  %vm1233_vm2 = vcmask (!%p307_p7), 261120  }
  0x1d   : > { %v1501_v10 = vld.sshfl [vmem:[%s1706_s20] sm:$0x33 pattern:$0x76325410] (!%p307_p7)  ;;  %373 = vperm.xlu1 (!%p307_p7), %1593, %v358_v9   ;;  %363 = vperm.xlu0 (!%p307_p7), %1592, %v356_v11   ;;  %v1212_v37 = vld [vmem:[%s1941_s4 + $0x18] sm:$0xff] (!%p307_p7)  ;;  %s1497_s15 = sshll.u32 (!%p307_p7), %s1488_s27, 1 }
  0x1e   : > { %v399_v12 = vcombine.high (!%p307_p7), %v1501_v10, %v1501_v10  ;;  %v409_v13 = vsel (!%p307_p7), %vm407_vm0, %v1501_v10, 0  ;;  %v1506_v14 = vld.sshfl [vmem:[%s1706_s20 + $0x4] sm:$0x33 pattern:$0x76325410] (!%p307_p7)  ;;  %p346_p8 = scmp.lt.s32.totalorder (!%p307_p7), %s1497_s15, 3 }
  0x1f   : > { %v501_v17 = vcombine.high (!%p307_p7), %v1506_v14, %v1506_v14  ;;  %v1511_v18 = vld.sshfl [vmem:[%s1706_s20 + $0x8] sm:$0x33 pattern:$0x76325410] (!%p307_p7)  ;;  %v503_v24 = vsel (!%p307_p7), %vm407_vm0, %v1506_v14, 0  ;;  %v1344_v38 = vld [vmem:[%s1943_s6] sm:$0xff] (!%p307_p7) }
  0x20   : > { %1502 = vmatprep.subr.msk.bf16.mxu0 (!%p307_p7), %vm407_vm0, %v399_v12  ;;  %1564 = vmatprep.subr.msk.bf16.mxu1 (!%p307_p7), %vm407_vm0, %v399_v12  ;;  %v603_v19 = vcombine.high (!%p307_p7), %v1511_v18, %v1511_v18  ;;  %v1516_v20 = vld.sshfl [vmem:[%s1706_s20 + $0xc] sm:$0x33 pattern:$0x76325410] (!%p307_p7)  ;;  %v605_v25 = vsel (!%p307_p7), %vm407_vm0, %v1511_v18, 0 }
  0x21   : > { %415 = vmatpush1.bf16.msra.mxu0 (!%p307_p7), %v409_v13  ;;  %1565 = vmatpush1.bf16.msra.mxu1 (!%p307_p7), %v409_v13  ;;  %v1521_v23 = vld.sshfl [vmem:[%s1706_s20 + $0x10] sm:$0x33 pattern:$0x76325410] (!%p307_p7)  ;;  %v705_v26 = vcombine.high (!%p307_p7), %v1516_v20, %v1516_v20  ;;  %v707_v32 = vsel (!%p307_p7), %vm407_vm0, %v1516_v20, 0 }
  0x22   : > { %1507 = vmatprep.subr.msk.bf16.mxu1 %vm407_vm0, %v501_v17  ;;  %1512 = vmatprep.subr.msk.bf16.mxu0 %vm407_vm0, %v603_v19  ;;  %v807_v27 = vcombine.high %v1521_v23, %v1521_v23  ;;  %v1526_v30 = vld.sshfl [vmem:[%s1706_s20 + $0x14] sm:$0x33 pattern:$0x76325410]  ;;  %v809_v33 = vsel %vm407_vm0, %v1521_v23, 0  ;;  %s1949_s15 = smov (!%p346_p8, %s1497_s15), 3 }
  0x23   : > { %378 = vperm.xlu1 %1593, %v359_v21   ;;  %368 = vperm.xlu0 %1592, %v357_v22   ;;  %v1531_v31 = vld.sshfl [vmem:[%s1706_s20 + $0x18] sm:$0x33 pattern:$0x76325410]  ;;  %v909_v34 = vcombine.high %v1526_v30, %v1526_v30  ;;  %v911_v40 = vsel %vm407_vm0, %v1526_v30, 0  ;;  %s1498_s16 = sshll.u32 %s1949_s15, 3 }
  0x24   : > { %1503 = vmatmul.mubr.msk.bf16.vlgmr.msra.gmra.mrb[0].mxu0 %vm400_vm1, %v1717_v15  ;;  %1504 = vmatmul.mubr.msk.bf16.vlgmr.msra.gmra.mrb[0].mxu1 %vm400_vm1, %v1722_v16  ;;  %v1011_v35 = vcombine.high %v1531_v31, %v1531_v31  ;;  %v1536_v39 = vld.sshfl [vmem:[%s1706_s20 + $0x1c] sm:$0x33 pattern:$0x76325410]  ;;  %v1013_v41 = vsel %vm407_vm0, %v1531_v31, 0  ;;  %s349_s19 = scalar_lea.vmem %s1944_s7, %s1498_s16 }
  0x25   : > { %509 = vmatpush1.bf16.msra.mxu1 %v503_v24  ;;  %611 = vmatpush1.bf16.msra.mxu0 %v605_v25  ;;  %v1113_v42 = vcombine.high %v1536_v39, %v1536_v39  ;;  %v1115_v43 = vsel %vm407_vm0, %v1536_v39, 0 }
  0x26   : > { %540 = vmatprep.mubr.bf16.mxu1 %v1620_v8  ;;  %642 = vmatprep.mubr.bf16.mxu0 %v1620_v8 }
  0x27   : > { %1517 = vmatprep.subr.msk.bf16.mxu1 %vm407_vm0, %v705_v26  ;;  %1522 = vmatprep.subr.msk.bf16.mxu0 %vm407_vm0, %v807_v27 }
  0x28   : > { %1215 = vperm.xlu0 %1592, %v1209_v28   ;;  %1220 = vperm.xlu1 %1593, %v1210_v29  }
  0x2c   : > { %1508 = vmatmul.mubr.msk.bf16.vlgmr.msra.gmra.mrb[4].mxu1 %vm400_vm1, %v1717_v15  ;;  %1513 = vmatmul.mubr.msk.bf16.vlgmr.msra.gmra.mrb[4].mxu0 %vm400_vm1, %v1717_v15 }
  0x2d   : > { %713 = vmatpush1.bf16.msra.mxu1 %v707_v32  ;;  %550 = vmatprep.mubr.bf16.mxu1 %v1620_v8 }
  0x2e   : > { %652 = vmatprep.mubr.bf16.mxu0 %v1620_v8  ;;  %815 = vmatpush1.bf16.msra.mxu0 %v809_v33 }
  0x2f   : > { %1527 = vmatprep.subr.msk.bf16.mxu1 %vm407_vm0, %v909_v34  ;;  %1532 = vmatprep.subr.msk.bf16.mxu0 %vm407_vm0, %v1011_v35 }
  0x30   : > { %1225 = vperm.xlu0 %1592, %v1211_v36   ;;  %1230 = vperm.xlu1 %1593, %v1212_v37  }
  0x34   : > { %1509 = vmatmul.mubr.msk.bf16.gmra.mrb[8].mxu1 %vm400_vm1, %v1722_v16  ;;  %1514 = vmatmul.mubr.msk.bf16.gmra.mrb[8].mxu0 %vm400_vm1, %v1722_v16 }
  0x35   : > { %744 = vmatprep.mubr.bf16.mxu1 %v1620_v8  ;;  %846 = vmatprep.mubr.bf16.mxu0 %v1620_v8 }
  0x36   : > { %1347 = vperm.xlu0 %1592, %v1344_v38  }
  0x3c   : > { %1518 = vmatmul.mubr.msk.bf16.vlgmr.msra.gmra.mrb[12].mxu1 %vm400_vm1, %v1717_v15  ;;  %1523 = vmatmul.mubr.msk.bf16.vlgmr.msra.gmra.mrb[12].mxu0 %vm400_vm1, %v1717_v15 }
  0x3d   : > { %917 = vmatpush1.bf16.msra.mxu1 %v911_v40  ;;  %754 = vmatprep.mubr.bf16.mxu1 %v1620_v8 }
  0x3e   : > { %856 = vmatprep.mubr.bf16.mxu0 %v1620_v8  ;;  %1019 = vmatpush1.bf16.msra.mxu0 %v1013_v41 }
  0x3f   : > { %1537 = vmatprep.subr.msk.bf16.mxu1 %vm407_vm0, %v1113_v42 }
  0x44   : > { %1519 = vmatmul.mubr.msk.bf16.gmra.mrb[16].mxu1 %vm400_vm1, %v1722_v16  ;;  %1524 = vmatmul.mubr.msk.bf16.gmra.mrb[16].mxu0 %vm400_vm1, %v1722_v16 }
  0x45   : > { %948 = vmatprep.mubr.bf16.mxu1 %v1620_v8  ;;  %1050 = vmatprep.mubr.bf16.mxu0 %v1620_v8 }
  0x4c   : > { %1528 = vmatmul.mubr.msk.bf16.vlgmr.msra.gmra.mrb[20].mxu1 %vm400_vm1, %v1717_v15  ;;  %1533 = vmatmul.mubr.msk.bf16.vlgmr.msra.gmra.mrb[20].mxu0 %vm400_vm1, %v1717_v15 }
  0x4d   : > { %1121 = vmatpush1.bf16.msra.mxu1 %v1115_v43  ;;  %958 = vmatprep.mubr.bf16.mxu1 %v1620_v8 }
  0x4e   : > { %1060 = vmatprep.mubr.bf16.mxu0 %v1620_v8 }
  0x54   : > { %1529 = vmatmul.mubr.msk.bf16.gmra.mrb[24].mxu1 %vm400_vm1, %v1722_v16  ;;  %1534 = vmatmul.mubr.msk.bf16.gmra.mrb[24].mxu0 %vm400_vm1, %v1722_v16 }
  0x55   : > { %1152 = vmatprep.mubr.bf16.mxu1 %v1620_v8  ;;  %1310 = vmatprep.mubr.f32.mxu0 %v1621_v44 }
  0x5c   : > { %1538 = vmatmul.mubr.msk.bf16.vlgmr.msra.gmra.mrb[28].mxu1 %vm400_vm1, %v1717_v15 }
  0x5d   : > { %1162 = vmatprep.mubr.bf16.mxu1 %v1620_v8 }
  0x64   : > { %1539 = vmatmul.mubr.msk.bf16.gmra.mrb[32].mxu1 %vm400_vm1, %v1722_v16 }
  0x65   : > { %1417 = vmatprep.mubr.f32.mxu1 %v1621_v44 }
  0x9c   : > { %v1815_v45 = vpop.permute.xlu1 %373  ;;  %v1817_v46 = vpop.permute.xlu0 %363 }
  0xa2   : > { %v1819_v47 = vpop.permute.xlu1 %378  ;;  %v1821_v48 = vpop.permute.xlu0 %368 }
  0xf7   : > { %v458_v49 = vpop.f32.mrb[0].mxu1  ;;  %v448_v50 = vpop.f32.mrb[0].mxu0 }
  0xf8   : > { %v459_v51 = vadd.f32 %v458_v49, %v1815_v45  ;;  %v460_v52 = vpop.f32.mrb[1].mxu1  ;;  %v449_v53 = vadd.f32 %v448_v50, %v1817_v46  ;;  %v450_v54 = vpop.f32.mrb[1].mxu0 }
  0xf9   : > { %v461_v55 = vadd.f32 %v460_v52, %v1815_v45  ;;  %v462_v56 = vpop.f32.mrb[2].mxu1  ;;  %v451_v57 = vadd.f32 %v450_v54, %v1817_v46  ;;  %v452_v58 = vpop.f32.mrb[2].mxu0 }
  0xfa   : > { %v471_v59 = vmax.f32 %v459_v51, 0.0  ;;  %v463_v60 = vadd.f32 %v462_v56, %v1819_v47  ;;  %v464_v61 = vpop.f32.mrb[3].mxu1  ;;  %v467_v62 = vmax.f32 %v449_v53, 0.0  ;;  %v453_v63 = vadd.f32 %v452_v58, %v1821_v48  ;;  %v454_v0 = vpop.f32.mrb[3].mxu0 }
  0xfb   : > { %v472_v1 = vmax.f32 %v461_v55, 0.0  ;;  %v465_v2 = vadd.f32 %v464_v61, %v1819_v47  ;;  %v468_v3 = vmax.f32 %v451_v57, 0.0  ;;  %v455_v4 = vadd.f32 %v454_v0, %v1821_v48 }
  0xfc   : > { %v479_v5 = vmul.f32 0.5, %v471_v59  ;;  %v473_v6 = vmax.f32 %v463_v60, 0.0  ;;  %v475_v7 = vmul.f32 0.5, %v467_v62  ;;  %v469_v8 = vmax.f32 %v453_v63, 0.0 }
  0xfd   : > { %v474_v9 = vmax.f32 %v465_v2, 0.0  ;;  %v476_v10 = vmul.f32 0.5, %v468_v3  ;;  %v470_v11 = vmax.f32 %v455_v4, 0.0  ;;  %v1833_v13 = vmul.f32 0.5, %v472_v1 }
  0xfe   : > { %v1831_v12 = vmul.f32 0.5, %v479_v5  ;;  %v1835_v14 = vmul.f32 0.5, %v473_v6  ;;  %v577_v15 = vmul.f32 0.5, %v475_v7  ;;  %v477_v19 = vmul.f32 0.5, %v469_v8 }
  0xff   : > { %v542_v16 = vpop.f32.mrb[4].mxu1  ;;  %v644_v17 = vpop.f32.mrb[4].mxu0  ;;  %v1837_v18 = vmul.f32 0.5, %v474_v9  ;;  %v578_v24 = vmul.f32 0.5, %v476_v10  ;;  %v478_v25 = vmul.f32 0.5, %v470_v11 }
 0x100   : > { %v543_v20 = vadd.f32 %v542_v16, %v1817_v46  ;;  %v544_v21 = vpop.f32.mrb[5].mxu1  ;;  %v645_v22 = vadd.f32 %v644_v17, %v1817_v46  ;;  %v646_v23 = vpop.f32.mrb[5].mxu0  ;;  %v579_v40 = vmul.f32 0.5, %v477_v19 }
 0x101   : > { %v545_v26 = vadd.f32 %v544_v21, %v1817_v46  ;;  %v546_v27 = vpop.f32.mrb[6].mxu1  ;;  %v647_v28 = vadd.f32 %v646_v23, %v1817_v46  ;;  %v648_v29 = vpop.f32.mrb[6].mxu0  ;;  %v580_v49 = vmul.f32 0.5, %v478_v25  ;;  %v582_v25 = vmul.f32 0.5, %v1833_v13 }
 0x102   : > { %v561_v30 = vmax.f32 %v543_v20, 0.0  ;;  %v547_v31 = vadd.f32 %v546_v27, %v1821_v48  ;;  %v548_v32 = vpop.f32.mrb[7].mxu1  ;;  %v663_v33 = vmax.f32 %v645_v22, 0.0  ;;  %v649_v34 = vadd.f32 %v648_v29, %v1821_v48  ;;  %v650_v35 = vpop.f32.mrb[7].mxu0 }
 0x103   : > { %v562_v36 = vmax.f32 %v545_v26, 0.0  ;;  %v549_v37 = vadd.f32 %v548_v32, %v1821_v48  ;;  %v664_v38 = vmax.f32 %v647_v28, 0.0  ;;  %v651_v39 = vadd.f32 %v650_v35, %v1821_v48 }
 0x104   : > { %v569_v41 = vmul.f32 0.5, %v561_v30  ;;  %v563_v42 = vmax.f32 %v547_v31, 0.0  ;;  %v665_v43 = vmax.f32 %v649_v34, 0.0  ;;  %v671_v55 = vmul.f32 0.5, %v663_v33 }
 0x105   : > { %v570_v50 = vmul.f32 0.5, %v562_v36  ;;  %v564_v51 = vmax.f32 %v549_v37, 0.0  ;;  %v666_v52 = vmax.f32 %v651_v39, 0.0  ;;  %v672_v56 = vmul.f32 0.5, %v664_v38 }
 0x106   : > { %v585_v53 = vadd.f32 %v577_v15, %v569_v41  ;;  %v571_v54 = vmul.f32 0.5, %v563_v42  ;;  %v673_v59 = vmul.f32 0.5, %v665_v43  ;;  %v583_v29 = vmul.f32 0.5, %v1835_v14 }
 0x107   : > { %v586_v57 = vadd.f32 %v578_v24, %v570_v50  ;;  %v572_v58 = vmul.f32 0.5, %v564_v51  ;;  %v674_v60 = vmul.f32 0.5, %v666_v52  ;;  %v552_v61 = vpop.f32.mrb[8].mxu1  ;;  %v654_v62 = vpop.f32.mrb[8].mxu0  ;;  %v584_v33 = vmul.f32 0.5, %v1837_v18 }
 0x108   : > { %v679_v63 = vmul.f32 0.5, %v585_v53  ;;  %v587_v0 = vadd.f32 %v579_v40, %v571_v54  ;;  %v553_v1 = vadd.f32 %v552_v61, %v1815_v45  ;;  %v554_v2 = vpop.f32.mrb[9].mxu1  ;;  %v655_v3 = vadd.f32 %v654_v62, %v1815_v45  ;;  %v656_v4 = vpop.f32.mrb[9].mxu0 }
 0x109   : > { %v680_v5 = vmul.f32 0.5, %v586_v57  ;;  %v588_v6 = vadd.f32 %v580_v49, %v572_v58  ;;  %v555_v7 = vadd.f32 %v554_v2, %v1815_v45  ;;  %v556_v8 = vpop.f32.mrb[10].mxu1  ;;  %v657_v9 = vadd.f32 %v656_v4, %v1815_v45  ;;  %v658_v10 = vpop.f32.mrb[10].mxu0 }
 0x10a   : > { %v681_v11 = vmul.f32 0.5, %v587_v0  ;;  %v687_v15 = vadd.f32 %v679_v63, %v671_v55  ;;  %v565_v16 = vmax.f32 %v553_v1, 0.0  ;;  %v557_v17 = vadd.f32 %v556_v8, %v1819_v47  ;;  %v558_v19 = vpop.f32.mrb[11].mxu1  ;;  %v660_v20 = vpop.f32.mrb[11].mxu0 }
 0x10b   : > { %v682_v21 = vmul.f32 0.5, %v588_v6  ;;  %v688_v22 = vadd.f32 %v680_v5, %v672_v56  ;;  %v566_v23 = vmax.f32 %v555_v7, 0.0  ;;  %v559_v24 = vadd.f32 %v558_v19, %v1819_v47 }
 0x10c   : > { %v689_v26 = vadd.f32 %v681_v11, %v673_v59  ;;  %v573_v27 = vmul.f32 0.5, %v565_v16  ;;  %v567_v28 = vmax.f32 %v557_v17, 0.0  ;;  %v667_v36 = vmax.f32 %v655_v3, 0.0 }
 0x10d   : > { %v690_v30 = vadd.f32 %v682_v21, %v674_v60  ;;  %v574_v31 = vmul.f32 0.5, %v566_v23  ;;  %v568_v32 = vmax.f32 %v559_v24, 0.0  ;;  %v781_v37 = vmul.f32 0.5, %v687_v15 }
 0x10e   : > { %v589_v34 = vadd.f32 %v1831_v12, %v573_v27  ;;  %v575_v35 = vmul.f32 0.5, %v567_v28  ;;  %v668_v40 = vmax.f32 %v657_v9, 0.0  ;;  %v675_v49 = vmul.f32 0.5, %v667_v36 }
 0x10f   : > { %v590_v38 = vadd.f32 %v582_v25, %v574_v31  ;;  %v576_v39 = vmul.f32 0.5, %v568_v32  ;;  %v746_v41 = vpop.f32.mrb[12].mxu1  ;;  %v848_v13 = vpop.f32.mrb[12].mxu0  ;;  %v659_v14 = vadd.f32 %v658_v10, %v1819_v47  ;;  %v661_v12 = vadd.f32 %v660_v20, %v1819_v47 }
 0x110   : > { %v683_v42 = vmul.f32 0.5, %v589_v34  ;;  %v591_v43 = vadd.f32 %v583_v29, %v575_v35  ;;  %v748_v50 = vpop.f32.mrb[13].mxu1  ;;  %v850_v51 = vpop.f32.mrb[13].mxu0  ;;  %v676_v18 = vmul.f32 0.5, %v668_v40  ;;  %v747_v59 = vadd.f32 %v746_v41, %v1817_v46 }
 0x111   : > { %v684_v52 = vmul.f32 0.5, %v590_v38  ;;  %v592_v53 = vadd.f32 %v584_v33, %v576_v39  ;;  %v750_v54 = vpop.f32.mrb[14].mxu1  ;;  %v852_v55 = vpop.f32.mrb[14].mxu0  ;;  %v669_v58 = vmax.f32 %v659_v14, 0.0  ;;  %v670_v0 = vmax.f32 %v661_v12, 0.0 }
 0x112   : > { %v685_v56 = vmul.f32 0.5, %v591_v43  ;;  %v691_v57 = vadd.f32 %v683_v42, %v675_v49  ;;  %v752_v60 = vpop.f32.mrb[15].mxu1  ;;  %v854_v61 = vpop.f32.mrb[15].mxu0  ;;  %v749_v1 = vadd.f32 %v748_v50, %v1817_v46  ;;  %v782_v2 = vmul.f32 0.5, %v688_v22 }
 0x113   : > { %v686_v62 = vmul.f32 0.5, %v592_v53  ;;  %v692_v63 = vadd.f32 %v684_v52, %v676_v18  ;;  %v677_v3 = vmul.f32 0.5, %v669_v58  ;;  %v765_v4 = vmax.f32 %v747_v59, 0.0 }
 0x114   : > { %v751_v5 = vadd.f32 %v750_v54, %v1821_v48  ;;  %v783_v6 = vmul.f32 0.5, %v689_v26  ;;  %v678_v7 = vmul.f32 0.5, %v670_v0  ;;  %v766_v8 = vmax.f32 %v749_v1, 0.0 }
 0x115   : > { %v849_v9 = vadd.f32 %v848_v13, %v1817_v46  ;;  %v693_v10 = vadd.f32 %v685_v56, %v677_v3  ;;  %v773_v11 = vmul.f32 0.5, %v765_v4  ;;  %v753_v16 = vadd.f32 %v752_v60, %v1821_v48 }
 0x116   : > { %v767_v15 = vmax.f32 %v751_v5, 0.0  ;;  %v694_v17 = vadd.f32 %v686_v62, %v678_v7  ;;  %v774_v19 = vmul.f32 0.5, %v766_v8  ;;  %v851_v21 = vadd.f32 %v850_v51, %v1817_v46 }
 0x117   : > { %v867_v20 = vmax.f32 %v849_v9, 0.0  ;;  %v756_v22 = vpop.f32.mrb[16].mxu1  ;;  %v858_v23 = vpop.f32.mrb[16].mxu0  ;;  %v784_v24 = vmul.f32 0.5, %v690_v30  ;;  %v789_v25 = vadd.f32 %v781_v37, %v773_v11  ;;  %v768_v26 = vmax.f32 %v753_v16, 0.0 }
 0x118   : > { %v775_v27 = vmul.f32 0.5, %v767_v15  ;;  %v758_v28 = vpop.f32.mrb[17].mxu1  ;;  %v860_v29 = vpop.f32.mrb[17].mxu0  ;;  %v785_v31 = vmul.f32 0.5, %v691_v57  ;;  %v790_v32 = vadd.f32 %v782_v2, %v774_v19  ;;  %v868_v34 = vmax.f32 %v851_v21, 0.0 }
 0x119   : > { %v875_v33 = vmul.f32 0.5, %v867_v20  ;;  %v760_v35 = vpop.f32.mrb[18].mxu1  ;;  %v862_v36 = vpop.f32.mrb[18].mxu0  ;;  %v883_v38 = vmul.f32 0.5, %v789_v25  ;;  %v776_v40 = vmul.f32 0.5, %v768_v26  ;;  %v853_v41 = vadd.f32 %v852_v55, %v1821_v48 }
 0x11a   : > { %v791_v39 = vadd.f32 %v783_v6, %v775_v27  ;;  %v762_v13 = vpop.f32.mrb[19].mxu1  ;;  %v864_v42 = vpop.f32.mrb[19].mxu0  ;;  %v884_v43 = vmul.f32 0.5, %v790_v32  ;;  %v876_v30 = vmul.f32 0.5, %v868_v34  ;;  %v855_v37 = vadd.f32 %v854_v61, %v1821_v48 }
 0x11b   : > { %v757_v49 = vadd.f32 %v756_v22, %v1815_v45  ;;  %v891_v50 = vadd.f32 %v883_v38, %v875_v33  ;;  %v792_v51 = vadd.f32 %v784_v24, %v776_v40  ;;  %v869_v52 = vmax.f32 %v853_v41, 0.0 }
 0x11c   : > { %v885_v14 = vmul.f32 0.5, %v791_v39  ;;  %v892_v53 = vadd.f32 %v884_v43, %v876_v30  ;;  %v870_v18 = vmax.f32 %v855_v37, 0.0  ;;  %v759_v54 = vadd.f32 %v758_v28, %v1815_v45 }
 0x11d   : > { %v769_v12 = vmax.f32 %v757_v49, 0.0  ;;  %v786_v56 = vmul.f32 0.5, %v692_v63  ;;  %v886_v57 = vmul.f32 0.5, %v792_v51  ;;  %v877_v55 = vmul.f32 0.5, %v869_v52 }
 0x11e   : > { %v761_v58 = vadd.f32 %v760_v35, %v1819_v47  ;;  %v787_v59 = vmul.f32 0.5, %v693_v10  ;;  %v878_v60 = vmul.f32 0.5, %v870_v18  ;;  %v770_v61 = vmax.f32 %v759_v54, 0.0 }
 0x11f   : > { %v777_v62 = vmul.f32 0.5, %v769_v12  ;;  %v950_v0 = vpop.f32.mrb[20].mxu1  ;;  %v1052_v1 = vpop.f32.mrb[20].mxu0  ;;  %v893_v2 = vadd.f32 %v885_v14, %v877_v55  ;;  %v859_v4 = vadd.f32 %v858_v23, %v1815_v45  ;;  %v763_v5 = vadd.f32 %v762_v13, %v1819_v47 }
 0x120   : > { %v771_v3 = vmax.f32 %v761_v58, 0.0  ;;  %v952_v6 = vpop.f32.mrb[21].mxu1  ;;  %v1054_v7 = vpop.f32.mrb[21].mxu0  ;;  %v894_v8 = vadd.f32 %v886_v57, %v878_v60  ;;  %v778_v9 = vmul.f32 0.5, %v770_v61  ;;  %v861_v11 = vadd.f32 %v860_v29, %v1815_v45 }
 0x121   : > { %v793_v63 = vadd.f32 %v785_v31, %v777_v62  ;;  %v954_v15 = vpop.f32.mrb[22].mxu1  ;;  %v1056_v10 = vpop.f32.mrb[22].mxu0  ;;  %v788_v16 = vmul.f32 0.5, %v694_v17  ;;  %v871_v20 = vmax.f32 %v859_v4, 0.0  ;;  %v772_v21 = vmax.f32 %v763_v5, 0.0 }
 0x122   : > { %v779_v19 = vmul.f32 0.5, %v771_v3  ;;  %v956_v22 = vpop.f32.mrb[23].mxu1  ;;  %v1058_v24 = vpop.f32.mrb[23].mxu0  ;;  %v985_v25 = vmul.f32 0.5, %v891_v50  ;;  %v794_v23 = vadd.f32 %v786_v56, %v778_v9  ;;  %v872_v26 = vmax.f32 %v861_v11, 0.0 }
 0x123   : > { %v887_v27 = vmul.f32 0.5, %v793_v63  ;;  %v879_v32 = vmul.f32 0.5, %v871_v20  ;;  %v780_v33 = vmul.f32 0.5, %v772_v21  ;;  %v863_v31 = vadd.f32 %v862_v36, %v1819_v47 }
 0x124   : > { %v795_v28 = vadd.f32 %v787_v59, %v779_v19  ;;  %v888_v34 = vmul.f32 0.5, %v794_v23  ;;  %v880_v35 = vmul.f32 0.5, %v872_v26  ;;  %v865_v29 = vadd.f32 %v864_v42, %v1819_v47 }
 0x125   : > { %v951_v17 = vadd.f32 %v950_v0, %v1817_v46  ;;  %v895_v39 = vadd.f32 %v887_v27, %v879_v32  ;;  %v796_v40 = vadd.f32 %v788_v16, %v780_v33  ;;  %v873_v41 = vmax.f32 %v863_v31, 0.0 }
 0x126   : > { %v889_v38 = vmul.f32 0.5, %v795_v28  ;;  %v896_v13 = vadd.f32 %v888_v34, %v880_v35  ;;  %v874_v43 = vmax.f32 %v865_v29, 0.0  ;;  %v1053_v37 = vadd.f32 %v1052_v1, %v1817_v46 }
 0x127   : > { %v969_v30 = vmax.f32 %v951_v17, 0.0  ;;  %v960_v49 = vpop.f32.mrb[24].mxu1  ;;  %v1062_v14 = vpop.f32.mrb[24].mxu0  ;;  %v986_v50 = vmul.f32 0.5, %v892_v53  ;;  %v890_v51 = vmul.f32 0.5, %v796_v40  ;;  %v881_v36 = vmul.f32 0.5, %v873_v41 }
 0x128   : > { %v953_v52 = vadd.f32 %v952_v6, %v1817_v46  ;;  %v962_v18 = vpop.f32.mrb[25].mxu1  ;;  %v1064_v42 = vpop.f32.mrb[25].mxu0  ;;  %v987_v12 = vmul.f32 0.5, %v893_v2  ;;  %v882_v54 = vmul.f32 0.5, %v874_v43  ;;  %v1071_v57 = vmax.f32 %v1053_v37, 0.0 }
 0x129   : > { %v977_v56 = vmul.f32 0.5, %v969_v30  ;;  %v964_v55 = vpop.f32.mrb[26].mxu1  ;;  %v1066_v58 = vpop.f32.mrb[26].mxu0  ;;  %v897_v59 = vadd.f32 %v889_v38, %v881_v36  ;;  %v1055_v62 = vadd.f32 %v1054_v7, %v1817_v46  ;;  %v955_v61 = vadd.f32 %v954_v15, %v1821_v48 }
 0x12a   : > { %v970_v60 = vmax.f32 %v953_v52, 0.0  ;;  %v966_v0 = vpop.f32.mrb[27].mxu1  ;;  %v1068_v53 = vpop.f32.mrb[27].mxu0  ;;  %v988_v1 = vmul.f32 0.5, %v894_v8  ;;  %v898_v3 = vadd.f32 %v890_v51, %v882_v54  ;;  %v1057_v5 = vadd.f32 %v1056_v10, %v1821_v48 }
 0x12b   : > { %v993_v4 = vadd.f32 %v985_v25, %v977_v56  ;;  %v989_v6 = vmul.f32 0.5, %v895_v39  ;;  %v1072_v63 = vmax.f32 %v1055_v62, 0.0  ;;  %v971_v9 = vmax.f32 %v955_v61, 0.0 }
 0x12c   : > { %v978_v2 = vmul.f32 0.5, %v970_v60  ;;  %v990_v11 = vmul.f32 0.5, %v896_v13  ;;  %v1079_v19 = vmul.f32 0.5, %v1071_v57  ;;  %v957_v20 = vadd.f32 %v956_v22, %v1821_v48 }
 0x12d   : > { %v1087_v16 = vmul.f32 0.5, %v993_v4  ;;  %v979_v7 = vmul.f32 0.5, %v971_v9  ;;  %v1073_v27 = vmax.f32 %v1057_v5, 0.0  ;;  %v1059_v15 = vadd.f32 %v1058_v24, %v1821_v48 }
 0x12e   : > { %v994_v21 = vadd.f32 %v986_v50, %v978_v2  ;;  %v1080_v8 = vmul.f32 0.5, %v1072_v63  ;;  %v972_v26 = vmax.f32 %v957_v20, 0.0  ;;  %v961_v25 = vadd.f32 %v960_v49, %v1815_v45 }
 0x12f   : > { %v1095_v23 = vadd.f32 %v1087_v16, %v1079_v19  ;;  %v1154_v10 = vpop.f32.mrb[28].mxu1  ;;  %v995_v32 = vadd.f32 %v987_v12, %v979_v7  ;;  %v1074_v33 = vmax.f32 %v1059_v15, 0.0  ;;  %v1063_v31 = vadd.f32 %v1062_v14, %v1815_v45 }
 0x130   : > { %v1088_v28 = vmul.f32 0.5, %v994_v21  ;;  %v1156_v34 = vpop.f32.mrb[29].mxu1  ;;  %v991_v35 = vmul.f32 0.5, %v897_v59  ;;  %v980_v29 = vmul.f32 0.5, %v972_v26  ;;  %v973_v22 = vmax.f32 %v961_v25, 0.0 }
 0x131   : > { %v963_v17 = vadd.f32 %v962_v18, %v1815_v45  ;;  %v1158_v38 = vpop.f32.mrb[30].mxu1  ;;  %v1089_v24 = vmul.f32 0.5, %v995_v32  ;;  %v1081_v40 = vmul.f32 0.5, %v1073_v27  ;;  %v1075_v41 = vmax.f32 %v1063_v31, 0.0 }
 0x132   : > { %v1096_v39 = vadd.f32 %v1088_v28, %v1080_v8  ;;  %v1160_v13 = vpop.f32.mrb[31].mxu1  ;;  %v996_v43 = vadd.f32 %v988_v1, %v980_v29  ;;  %v981_v30 = vmul.f32 0.5, %v973_v22  ;;  %v1065_v49 = vadd.f32 %v1064_v42, %v1815_v45 }
 0x133   : > { %v974_v37 = vmax.f32 %v963_v17, 0.0  ;;  %v992_v50 = vmul.f32 0.5, %v898_v3  ;;  %v1097_v51 = vadd.f32 %v1089_v24, %v1081_v40  ;;  %v1082_v14 = vmul.f32 0.5, %v1074_v33 }
 0x134   : > { %v965_v36 = vadd.f32 %v964_v55, %v1819_v47  ;;  %v1090_v52 = vmul.f32 0.5, %v996_v43  ;;  %v997_v12 = vadd.f32 %v989_v6, %v981_v30  ;;  %v1076_v18 = vmax.f32 %v1065_v49, 0.0 }
 0x135   : > { %v982_v54 = vmul.f32 0.5, %v974_v37  ;;  %v1189_v56 = vmul.f32 0.5, %v1095_v23  ;;  %v1067_v59 = vadd.f32 %v1066_v58, %v1819_v47  ;;  %v967_v60 = vadd.f32 %v966_v0, %v1819_v47 }
 0x136   : > { %v975_v57 = vmax.f32 %v965_v36, 0.0  ;;  %v1098_v62 = vadd.f32 %v1090_v52, %v1082_v14  ;;  %v1091_v61 = vmul.f32 0.5, %v997_v12  ;;  %v1083_v1 = vmul.f32 0.5, %v1075_v41 }
 0x137   : > { %v998_v4 = vadd.f32 %v990_v11, %v982_v54  ;;  %v1164_v42 = vpop.f32.mrb[32].mxu1  ;;  %v1077_v5 = vmax.f32 %v1067_v59, 0.0  ;;  %v976_v2 = vmax.f32 %v967_v60, 0.0  ;;  %v1069_v55 = vadd.f32 %v1068_v53, %v1819_v47 }
 0x138   : > { %v983_v3 = vmul.f32 0.5, %v975_v57  ;;  %v1166_v63 = vpop.f32.mrb[33].mxu1  ;;  %v1099_v6 = vadd.f32 %v1091_v61, %v1083_v1  ;;  %v1084_v16 = vmul.f32 0.5, %v1076_v18  ;;  %v1155_v19 = vadd.f32 %v1154_v10, %v1817_v46 }
 0x139   : > { %v1092_v9 = vmul.f32 0.5, %v998_v4  ;;  %v1168_v20 = vpop.f32.mrb[34].mxu1  ;;  %v1190_v58 = vmul.f32 0.5, %v1096_v39  ;;  %v984_v0 = vmul.f32 0.5, %v976_v2  ;;  %v1078_v7 = vmax.f32 %v1069_v55, 0.0  ;;  %v1206_v2 = vld [vmem:[%s1940_s3 + $0x8] sm:$0xff] }
 0x13a   : > { %v999_v21 = vadd.f32 %v991_v35, %v983_v3  ;;  %v1170_v27 = vpop.f32.mrb[35].mxu1  ;;  %v1191_v15 = vmul.f32 0.5, %v1097_v51  ;;  %v1173_v23 = vmax.f32 %v1155_v19, 0.0  ;;  %v1157_v8 = vadd.f32 %v1156_v34, %v1817_v46  ;;  %v1207_v55 = vld [vmem:[%s1940_s3 + $0x10] sm:$0xff] }
 0x13b   : > { %v1100_v11 = vadd.f32 %v1092_v9, %v1084_v16  ;;  %v1085_v25 = vmul.f32 0.5, %v1077_v5  ;;  %v1000_v53 = vadd.f32 %v992_v50, %v984_v0  ;;  %v1159_v28 = vadd.f32 %v1158_v38, %v1821_v48  ;;  %v1216_v16 = vpop.permute.xlu0 %1215 }
 0x13c   : > { %v1093_v26 = vmul.f32 0.5, %v999_v21  ;;  %v1086_v32 = vmul.f32 0.5, %v1078_v7  ;;  %v1181_v33 = vmul.f32 0.5, %v1173_v23  ;;  %v1174_v31 = vmax.f32 %v1157_v8, 0.0 }
 0x13d   : > { %v1161_v10 = vadd.f32 %v1160_v13, %v1821_v48  ;;  %v1094_v35 = vmul.f32 0.5, %v1000_v53  ;;  %v1175_v22 = vmax.f32 %v1159_v28, 0.0  ;;  %v1165_v17 = vadd.f32 %v1164_v42, %v1815_v45 }
 0x13e   : > { %v1101_v29 = vadd.f32 %v1093_v26, %v1085_v25  ;;  %v1197_v39 = vadd.f32 %v1189_v56, %v1181_v33  ;;  %v1182_v24 = vmul.f32 0.5, %v1174_v31  ;;  %v1167_v46 = vadd.f32 %v1166_v63, %v1815_v45  ;;  %v1208_v63 = vld [vmem:[%s1940_s3 + $0x18] sm:$0xff] }
 0x13f   : > { %v1176_v40 = vmax.f32 %v1161_v10, 0.0  ;;  %v1192_v34 = vmul.f32 0.5, %v1098_v62  ;;  %v1102_v41 = vadd.f32 %v1094_v35, %v1086_v32  ;;  %v1183_v43 = vmul.f32 0.5, %v1175_v22  ;;  %v1226_v53 = vpop.permute.xlu0 %1225 }
 0x140   : > { %v1177_v30 = vmax.f32 %v1165_v17, 0.0  ;;  %v1198_v38 = vadd.f32 %v1190_v58, %v1182_v24  ;;  %v1178_v49 = vmax.f32 %v1167_v46, 0.0  ;;  %v1169_v50 = vadd.f32 %v1168_v20, %v1819_v47  ;;  %v1221_v20 = vpop.permute.xlu1 %1220 }
 0x141   : > { %v1184_v37 = vmul.f32 0.5, %v1176_v40  ;;  %v1193_v48 = vmul.f32 0.5, %v1099_v6  ;;  %v1199_v13 = vadd.f32 %v1191_v15, %v1183_v43  ;;  %v1171_v14 = vadd.f32 %v1170_v27, %v1819_v47  ;;  %v1205_v47 = vld [vmem:[%s1940_s3] sm:$0xff] }
 0x142   : > { %v1185_v51 = vmul.f32 0.5, %v1177_v30  ;;  %v1194_v36 = vmul.f32 0.5, %v1100_v11  ;;  %v1186_v12 = vmul.f32 0.5, %v1178_v49  ;;  %v1179_v54 = vmax.f32 %v1169_v50, 0.0 }
 0x143   : > { %v1200_v52 = vadd.f32 %v1192_v34, %v1184_v37  ;;  %v1550_v18 = vpack.c.bf16 %v1199_v13, %v1197_v39  ;;  %v1180_v56 = vmax.f32 %v1171_v14, 0.0  ;;  %v1195_v57 = vmul.f32 0.5, %v1101_v29  ;;  %v1348_v43 = vpop.permute.xlu0 %1347 }
 0x144   : > { %v1201_v45 = vadd.f32 %v1193_v48, %v1185_v51  ;;  %v1202_v59 = vadd.f32 %v1194_v36, %v1186_v12  ;;  %v1187_v60 = vmul.f32 0.5, %v1179_v54  ;;  %v1196_v61 = vmul.f32 0.5, %v1102_v41  ;;  %v1231_v33 = vpop.permute.xlu1 %1230  ;;  %v1343_v41 = vld [vmem:[%s1942_s5] sm:$0xff] }
 0x145   : > { %v1548_v62 = vpack.c.bf16 %v1200_v52, %v1198_v38  ;;  %v1188_v1 = vmul.f32 0.5, %v1180_v56 }
 0x146   : > { %v1203_v4 = vadd.f32 %v1195_v57, %v1187_v60 }
 0x147   : > { %1549 = vmatprep.subr.bf16.mxu0 %v1548_v62  ;;  %v1204_v42 = vadd.f32 %v1196_v61, %v1188_v1 }
 0x148   : > { %1551 = vmatpush1.bf16.msra.mxu0 %v1550_v18  ;;  %v1554_v3 = vpack.c.bf16 %v1203_v4, %v1201_v45 }
 0x149   : > { %v1552_v5 = vpack.c.bf16 %v1204_v42, %v1202_v59 }
 0x14b   : > { %1553 = vmatprep.subr.bf16.mxu0 %v1552_v5 }
 0x14c   : > { %1555 = vmatpush1.bf16.msra.mxu0 %v1554_v3 }
 0x14f   : > { %1540 = vmatmul.mubr.msk.f32.vlgmr.msra.gmra.mrb[28].mxu0 %vm1233_vm2, %v1205_v47 }
 0x150   : > { %1316 = vmatprep.mubr.f32.mxu0 %v1621_v44 }
 0x153   : > { %1541 = vmatmul.mubr.msk.f32.gmra.mrb[30].mxu0 %vm1233_vm2, %v1206_v2 }
 0x154   : > { %1322 = vmatprep.mubr.f32.mxu0 %v1621_v44 }
 0x157   : > { %1542 = vmatmul.mubr.msk.f32.gmra.mrb[32].mxu0 %vm1233_vm2, %v1207_v55 }
 0x158   : > { %1328 = vmatprep.mubr.f32.mxu0 %v1621_v44 }
 0x15b   : > { %1543 = vmatmul.mubr.msk.f32.gmra.mrb[34].mxu0 %vm1233_vm2, %v1208_v63 }
 0x222   : > { %v1312_v6 = vpop.f32.mrb[28].mxu0 }
 0x223   : > { %v1314_v9 = vpop.f32.mrb[29].mxu0  ;;  %v1313_v19 = vadd.f32 %v1312_v6, %v1216_v16 }
 0x224   : > { %v1315_v58 = vadd.f32 %v1314_v9, %v1216_v16 }
 0x225   : > { %v1335_v15 = vmax.f32 %v1313_v19, 0.0 }
 0x226   : > { %v1318_v21 = vpop.f32.mrb[30].mxu0  ;;  %v1336_v23 = vmax.f32 %v1315_v58, 0.0 }
 0x227   : > { %v1319_v0 = vadd.f32 %v1318_v21, %v1221_v20  ;;  %v1320_v7 = vpop.f32.mrb[31].mxu0 }
 0x228   : > { %v1321_v27 = vadd.f32 %v1320_v7, %v1221_v20 }
 0x229   : > { %v1337_v11 = vmax.f32 %v1319_v0, 0.0 }
 0x22a   : > { %v1338_v44 = vmax.f32 %v1321_v27, 0.0  ;;  %v1324_v8 = vpop.f32.mrb[32].mxu0 }
 0x22b   : > { %v1558_v26 = vpack.c.bf16 %v1337_v11, %v1335_v15  ;;  %v1326_v25 = vpop.f32.mrb[33].mxu0  ;;  %v1325_v32 = vadd.f32 %v1324_v8, %v1226_v53 }
 0x22c   : > { %v1556_v28 = vpack.c.bf16 %v1338_v44, %v1336_v23  ;;  %v1327_v31 = vadd.f32 %v1326_v25, %v1226_v53 }
 0x22d   : > { %v1339_v17 = vmax.f32 %v1325_v32, 0.0 }
 0x22e   : > { %v1330_v10 = vpop.f32.mrb[34].mxu0  ;;  %1557 = vmatprep.subr.bf16.mxu1 %v1556_v28  ;;  %v1340_v24 = vmax.f32 %v1327_v31, 0.0 }
 0x22f   : > { %v1331_v29 = vadd.f32 %v1330_v10, %v1231_v33  ;;  %v1332_v35 = vpop.f32.mrb[35].mxu0  ;;  %1559 = vmatpush1.bf16.msra.mxu1 %v1558_v26 }
 0x230   : > { %v1333_v22 = vadd.f32 %v1332_v35, %v1231_v33 }
 0x231   : > { %v1341_v39 = vmax.f32 %v1331_v29, 0.0 }
 0x232   : > { %v1342_v40 = vmax.f32 %v1333_v22, 0.0 }
 0x233   : > { %v1562_v46 = vpack.c.bf16 %v1341_v39, %v1339_v17 }
 0x234   : > { %v1560_v34 = vpack.c.bf16 %v1342_v40, %v1340_v24 }
 0x236   : > { %1561 = vmatprep.subr.bf16.mxu1 %v1560_v34 }
 0x237   : > { %1563 = vmatpush1.bf16.msra.mxu1 %v1562_v46 }
 0x23a   : > { %1544 = vmatmul.mubr.msk.f32.vlgmr.msra.gmra.mrb[36].mxu1 %vm1233_vm2, %v1343_v41 }
 0x30d   : > { %v1419_v30 = vpop.f32.mrb[36].mxu1 }
 0x30e   : > { %v1420_v38 = vadd.f32 %v1419_v30, %v1348_v43  ;;  %v1421_v37 = vpop.f32.mrb[37].mxu1 }
 0x30f   : > { %v1422_v49 = vadd.f32 %v1421_v37, %v1348_v43 }
 0x310   : > { %1424 = vst [vmem:[%s349_s19] sm:$0xff] %v1420_v38 }
 0x311   : > { %1425 = vst [vmem:[%s349_s19 + $0x8] sm:$0xff] %v1422_v49 }
 0x312 PF: > { %p14_p9 = scmp.ge.s32.totalorder %s1679_s28, 4   ;;  %s1945_s24 = smov %s1614_s25 }
 0x313   : > { %s1946_s25 = smov %s1688_s8  ;;  %s1947_s26 = smov %s1679_s28 }
 0x314   :  { %16 = sbr.rel (!%p14_p9) target bundleno = 2 (0x2), region = 131 }

</bundles_post_ra>
